<compile_context>
chip_gen: v6e
topology: v6e:2x2x1
jax: 0.10.0
libtpu: 0.0.40
codegen_flags: <defaults>
</compile_context>

<pallas_src>
import math

import numpy as np

import jax
import jax.numpy as jnp
from jax import lax
from jax.experimental import pallas as pl
from jax.experimental.pallas import tpu as pltpu


def _round_up(n, m):
    return ((n + m - 1) // m) * m


def _pad2(a, rows, cols):
    return jnp.pad(a, ((0, rows - a.shape[0]), (0, cols - a.shape[1])))


def make_arc_cos_kernel(n_layers, rad, margin, eps, norm_eps, out_cls, use_target):
    # cos(acos(t) + m) = t*cos(m) - sqrt(1 - t^2)*sin(m); exact for
    # t in [eps, 1 - eps], matching the reference module's clamp.
    cos_m = math.cos(margin)
    sin_m = math.sin(margin)

    def kernel(*refs):
        idx = 0
        if use_target:
            tar_ref = refs[idx]; idx += 1            # (TB, 1) int32
        x_ref = refs[idx]; idx += 1                  # (TB, F_pad) bf16
        layer_refs = refs[idx: idx + 2 * n_layers]   # (W(in,out) bf16, b(1,out) f32)*
        idx += 2 * n_layers
        lin_ref = refs[idx]; idx += 1                # (UN_pad, C_pad) bf16 (pre-normalized)
        out_ref = refs[idx]                          # (TB, C_pad) f32

        # ---- MLP: (Linear + ReLU) stack; bf16 MXU matmuls, f32 accumulate ----
        h = x_ref[...]                               # bf16
        for i in range(n_layers):
            w = layer_refs[2 * i][...]               # (in, out) bf16 (pre-transposed)
            b = layer_refs[2 * i + 1][...]           # (1, out) f32
            h = jnp.dot(h.astype(jnp.bfloat16), w,
                        preferred_element_type=jnp.float32) + b
            h = jnp.maximum(h, 0.0)                  # ReLU, f32

        # ---- F.normalize(X, dim=1, p=2, eps=norm_eps): x / max(||x||, eps) ----
        sq = jnp.sum(h * h, axis=1, keepdims=True)
        x_norm = h * lax.rsqrt(jnp.maximum(sq, norm_eps * norm_eps))  # EUP rsqrt

        # ---- cosine similarity against pre-normalized class weights ----
        cos_t = jnp.dot(x_norm.astype(jnp.bfloat16), lin_ref[...],
                        preferred_element_type=jnp.float32)
        cos_t = jnp.clip(cos_t, eps, 1.0 - eps)      # matches reference clamp

        col = lax.broadcasted_iota(jnp.int32, cos_t.shape, 1)
        if use_target:
            if margin > 0:
                is_tar = col == tar_ref[...]
                cos_margin = (cos_t * cos_m
                              - jnp.sqrt(jnp.maximum(1.0 - cos_t * cos_t, 0.0)) * sin_m)
                cos_t = jnp.where(is_tar, cos_margin, cos_t)
            out_ref[...] = cos_t * rad
        else:
            y = cos_t * rad
            y = jnp.where(col < out_cls, y, -jnp.inf)        # mask padded classes
            y = y - jnp.max(y, axis=1, keepdims=True)
            e = jnp.exp(y)
            denom = jnp.sum(e, axis=1, keepdims=True)
            out_ref[...] = e * pl.reciprocal(denom, approx=True)

    return kernel


def arc_cos_head_forward(x, layer_params, lin, *, rad, margin, target=None,
                         tile_b=128, eps=1e-6, norm_eps=1e-12):
    """x: (B, in_feats) f32; layer_params: [(W(out,in), b(out,)), ...]; lin: (out_cls, un)."""
    B, in_feats = x.shape
    out_cls = lin.shape[0]
    n_layers = len(layer_params)
    use_target = target is not None

    # Adaptive row tile: don't pad a tiny batch all the way to 128 rows.
    tile_b = min(tile_b, _round_up(B, 8))
    B_pad = _round_up(B, tile_b)
    F_pad = _round_up(in_feats, 128)
    C_pad = _round_up(out_cls, 128)

    # Inputs: zero-pad batch/features, cast to bf16 once.
    x_p = _pad2(x.astype(jnp.float32), B_pad, F_pad).astype(jnp.bfloat16)

    # Layers: pre-transpose W to (in, out), zero-pad to 128-multiples, bf16.
    w_list, b_list = [], []
    d_in = F_pad
    for (w, b) in layer_params:
        un = w.shape[0]
        un_pad = _round_up(un, 128)
        wt = _pad2(w.T.astype(jnp.float32), d_in, un_pad).astype(jnp.bfloat16)
        bp = jnp.pad(b.astype(jnp.float32), (0, un_pad - un)).reshape(1, un_pad)
        w_list.append(wt)
        b_list.append(bp)
        d_in = un_pad
    UN_pad = d_in

    # Class weights: L2-normalize once in f32 (hoisted out of the per-tile
    # path), transpose to (un, out_cls), zero-pad, cast to bf16.
    lin32 = lin.astype(jnp.float32)
    lin_n = lin32 / jnp.maximum(
        jnp.sqrt(jnp.sum(lin32 * lin32, axis=1, keepdims=True)), norm_eps)
    lin_t = _pad2(lin_n.T, UN_pad, C_pad).astype(jnp.bfloat16)

    inputs, in_specs = [], []
    if use_target:
        tar = jnp.pad(target.astype(jnp.int32), (0, B_pad - B)).reshape(B_pad, 1)
        inputs.append(tar)
        in_specs.append(pl.BlockSpec((tile_b, 1), lambda b: (b, 0)))

    inputs.append(x_p)
    in_specs.append(pl.BlockSpec((tile_b, F_pad), lambda b: (b, 0)))

    for wt, bp in zip(w_list, b_list):
        inputs += [wt, bp]
        in_specs += [pl.BlockSpec(wt.shape, lambda b: (0, 0)),   # grid-invariant
                     pl.BlockSpec(bp.shape, lambda b: (0, 0))]

    inputs.append(lin_t)
    in_specs.append(pl.BlockSpec(lin_t.shape, lambda b: (0, 0)))

    kernel = make_arc_cos_kernel(
        n_layers=n_layers, rad=rad, margin=margin, eps=eps, norm_eps=norm_eps,
        out_cls=out_cls, use_target=use_target)

    out = pl.pallas_call(
        kernel,
        out_shape=jax.ShapeDtypeStruct((B_pad, C_pad), jnp.float32),
        grid=(B_pad // tile_b,),
        in_specs=in_specs,
        out_specs=pl.BlockSpec((tile_b, C_pad), lambda b: (b, 0)),
        compiler_params=pltpu.CompilerParams(
            dimension_semantics=("parallel",)),
    )(*inputs)

    # TODO(synk): for ArcFace-scale out_cls (10k+), add a class-tile grid axis
    # with an online softmax instead of one lane-dense class block per step.
    return out[:B, :out_cls]


def reference_forward(x, layer_params, lin, *, rad, margin, target=None,
                      eps=1e-6, norm_eps=1e-12):
    """Pure-JAX reference mirroring the kernel's bf16-matmul / f32-accumulate choices."""
    h = x.astype(jnp.float32)
    for (w, b) in layer_params:
        h = jnp.dot(h.astype(jnp.bfloat16), w.T.astype(jnp.bfloat16),
                    preferred_element_type=jnp.float32) + b.astype(jnp.float32)
        h = jnp.maximum(h, 0.0)
    x_norm = h * lax.rsqrt(jnp.maximum(jnp.sum(h * h, axis=1, keepdims=True),
                                       norm_eps * norm_eps))
    lin32 = lin.astype(jnp.float32)
    lin_n = lin32 / jnp.maximum(
        jnp.sqrt(jnp.sum(lin32 * lin32, axis=1, keepdims=True)), norm_eps)
    cos_t = jnp.dot(x_norm.astype(jnp.bfloat16), lin_n.T.astype(jnp.bfloat16),
                    preferred_element_type=jnp.float32)
    cos_t = jnp.clip(cos_t, eps, 1.0 - eps)
    if target is not None:
        if margin > 0:
            one_hot = jax.nn.one_hot(target, lin.shape[0], dtype=jnp.bool_)
            cos_margin = jnp.cos(jnp.arccos(cos_t) + margin)
            cos_t = jnp.where(one_hot, cos_margin, cos_t)
        return cos_t * rad
    return jax.nn.softmax(cos_t * rad, axis=1)


def init_params(key, in_feats, head_arch, out_cls):
    """Deterministic synthetic init mirroring the module's parameter shapes."""
    params = []
    ch = in_feats
    for un in head_arch:
        key, kw, kb = jax.random.split(key, 3)
        bound = 1.0 / math.sqrt(ch)
        w = jax.random.uniform(kw, (un, ch), jnp.float32, -bound, bound)
        b = jax.random.uniform(kb, (un,), jnp.float32, -bound, bound)
        params.append((w, b))
        ch = un
    key, kl = jax.random.split(key)
    stdv = math.sqrt(2.0 / (out_cls * ch))
    lin = jax.random.uniform(kl, (out_cls, ch), jnp.float32, -stdv, stdv)
    return params, lin


if __name__ == "__main__":
    # args equivalent: head_arch=[64, 32], out_cls=16, arc_cos_rad=16.0, arc_cos_margin=0.2
    B, in_feats = 16, 32
    head_arch = [64, 32]
    out_cls = 16
    rad, margin = 16.0, 0.2

    key = jax.random.PRNGKey(0)
    key, kx, kt = jax.random.split(key, 3)
    x = jax.random.normal(kx, (B, in_feats), jnp.float32)
    target = jax.random.randint(kt, (B,), 0, out_cls, jnp.int32)

    layer_params, lin = init_params(jax.random.PRNGKey(0), in_feats, head_arch, out_cls)

    # Inference path (target=None): softmax(cos_t * rad, dim=1)
    y_infer = arc_cos_head_forward(x, layer_params, lin, rad=rad, margin=margin)
    jax.block_until_ready(y_infer)

    # Training path (target given, margin>0): arc-cos margin at the target class.
    y_train = arc_cos_head_forward(x, layer_params, lin, rad=rad, margin=margin,
                                   target=target)
    jax.block_until_ready(y_train)

    assert y_infer.shape == (B, out_cls) and y_train.shape == (B, out_cls)

    # Sanity-check against a same-precision pure-JAX reference (loose tolerance
    # for bf16 rounding / approx reciprocal).
    r_infer = reference_forward(x, layer_params, lin, rad=rad, margin=margin)
    r_train = reference_forward(x, layer_params, lin, rad=rad, margin=margin,
                                target=target)
    np.testing.assert_allclose(np.asarray(y_infer), np.asarray(r_infer),
                               rtol=2e-2, atol=2e-2)
    np.testing.assert_allclose(np.asarray(y_train), np.asarray(r_train),
                               rtol=2e-2, atol=2e-2)

    print("KERNEL_OK")
</pallas_src>

<mosaic_0001>
module attributes {stable_mosaic.version = 11 : i64} {
  func.func @kernel(%arg0: i32, %arg1: memref<16x128xbf16, #tpu.memory_space<vmem>>, %arg2: memref<128x128xbf16, #tpu.memory_space<vmem>>, %arg3: memref<1x128xf32, #tpu.memory_space<vmem>>, %arg4: memref<128x128xbf16, #tpu.memory_space<vmem>>, %arg5: memref<1x128xf32, #tpu.memory_space<vmem>>, %arg6: memref<128x128xbf16, #tpu.memory_space<vmem>>, %arg7: memref<16x128xf32, #tpu.memory_space<vmem>>) attributes {dimension_semantics = [#tpu.dimension_semantics<parallel>], iteration_bounds = array<i64: 1>, scalar_prefetch = 0 : i64, scratch_operands = 0 : i64, tpu.core_type = #tpu.core_type<tc>, window_params = [{transform_indices = @transform_0, window_bounds = array<i64: 16, 128>}, {pipeline_mode = #tpu.pipeline_mode<synchronous>, transform_indices = @transform_1, window_bounds = array<i64: 128, 128>}, {pipeline_mode = #tpu.pipeline_mode<synchronous>, transform_indices = @transform_2, window_bounds = array<i64: 1, 128>}, {pipeline_mode = #tpu.pipeline_mode<synchronous>, transform_indices = @transform_3, window_bounds = array<i64: 128, 128>}, {pipeline_mode = #tpu.pipeline_mode<synchronous>, transform_indices = @transform_4, window_bounds = array<i64: 1, 128>}, {pipeline_mode = #tpu.pipeline_mode<synchronous>, transform_indices = @transform_5, window_bounds = array<i64: 128, 128>}, {transform_indices = @transform_6, window_bounds = array<i64: 16, 128>}]} {
    %c0 = arith.constant 0 : index
    %c0_0 = arith.constant 0 : index
    %0 = vector.load %arg1[%c0, %c0_0] : memref<16x128xbf16, #tpu.memory_space<vmem>>, vector<16x128xbf16>
    %c0_1 = arith.constant 0 : index
    %c0_2 = arith.constant 0 : index
    %1 = vector.load %arg2[%c0_1, %c0_2] : memref<128x128xbf16, #tpu.memory_space<vmem>>, vector<128x128xbf16>
    %c0_3 = arith.constant 0 : index
    %c0_4 = arith.constant 0 : index
    %2 = vector.load %arg3[%c0_3, %c0_4] : memref<1x128xf32, #tpu.memory_space<vmem>>, vector<1x128xf32>
    %cst = arith.constant dense<0.000000e+00> : vector<16x128xf32>
    %3 = tpu.matmul %0, %1, %cst {dimension_numbers = #tpu.dot_dimension_numbers<[1], [0], [0], [1], [0, 0, 1, 1], [], []>} : vector<16x128xbf16>, vector<128x128xbf16>, vector<16x128xf32> -> vector<16x128xf32>
    %4 = vector.broadcast %2 : vector<1x128xf32> to vector<16x128xf32>
    %5 = arith.addf %3, %4 : vector<16x128xf32>
    %cst_5 = arith.constant 0.000000e+00 : f32
    %6 = vector.broadcast %cst_5 : f32 to vector<16x128xf32>
    %7 = arith.maximumf %5, %6 : vector<16x128xf32>
    %c0_6 = arith.constant 0 : index
    %c0_7 = arith.constant 0 : index
    %8 = vector.load %arg4[%c0_6, %c0_7] : memref<128x128xbf16, #tpu.memory_space<vmem>>, vector<128x128xbf16>
    %c0_8 = arith.constant 0 : index
    %c0_9 = arith.constant 0 : index
    %9 = vector.load %arg5[%c0_8, %c0_9] : memref<1x128xf32, #tpu.memory_space<vmem>>, vector<1x128xf32>
    %10 = arith.truncf %7 : vector<16x128xf32> to vector<16x128xbf16>
    %cst_10 = arith.constant dense<0.000000e+00> : vector<16x128xf32>
    %11 = tpu.matmul %10, %8, %cst_10 {dimension_numbers = #tpu.dot_dimension_numbers<[1], [0], [0], [1], [0, 0, 1, 1], [], []>} : vector<16x128xbf16>, vector<128x128xbf16>, vector<16x128xf32> -> vector<16x128xf32>
    %12 = vector.broadcast %9 : vector<1x128xf32> to vector<16x128xf32>
    %13 = arith.addf %11, %12 : vector<16x128xf32>
    %cst_11 = arith.constant 0.000000e+00 : f32
    %14 = vector.broadcast %cst_11 : f32 to vector<16x128xf32>
    %15 = arith.maximumf %13, %14 : vector<16x128xf32>
    %16 = arith.mulf %15, %15 : vector<16x128xf32>
    %cst_12 = arith.constant dense<0.000000e+00> : vector<16xf32>
    %17 = vector.multi_reduction <add>, %16, %cst_12 [1] : vector<16x128xf32> to vector<16xf32>
    %18 = vector.shape_cast %17 : vector<16xf32> to vector<16x1xf32>
    %cst_13 = arith.constant 1.000000e-24 : f32
    %19 = vector.broadcast %cst_13 : f32 to vector<16x1xf32>
    %20 = arith.maximumf %18, %19 : vector<16x1xf32>
    %21 = math.rsqrt %20 : vector<16x1xf32>
    %22 = vector.broadcast %21 : vector<16x1xf32> to vector<16x128xf32>
    %23 = arith.mulf %15, %22 : vector<16x128xf32>
    %24 = arith.truncf %23 : vector<16x128xf32> to vector<16x128xbf16>
    %c0_14 = arith.constant 0 : index
    %c0_15 = arith.constant 0 : index
    %25 = vector.load %arg6[%c0_14, %c0_15] : memref<128x128xbf16, #tpu.memory_space<vmem>>, vector<128x128xbf16>
    %cst_16 = arith.constant dense<0.000000e+00> : vector<16x128xf32>
    %26 = tpu.matmul %24, %25, %cst_16 {dimension_numbers = #tpu.dot_dimension_numbers<[1], [0], [0], [1], [0, 0, 1, 1], [], []>} : vector<16x128xbf16>, vector<128x128xbf16>, vector<16x128xf32> -> vector<16x128xf32>
    %cst_17 = arith.constant 9.99999997E-7 : f32
    %cst_18 = arith.constant 0.999998986 : f32
    %27 = vector.broadcast %cst_17 : f32 to vector<16x128xf32>
    %28 = arith.maximumf %27, %26 : vector<16x128xf32>
    %29 = vector.broadcast %cst_18 : f32 to vector<16x128xf32>
    %30 = arith.minimumf %29, %28 : vector<16x128xf32>
    %31 = tpu.iota {dimensions = array<i32: 1>} : vector<16x128xi32>
    %cst_19 = arith.constant 1.600000e+01 : f32
    %32 = vector.broadcast %cst_19 : f32 to vector<16x128xf32>
    %33 = arith.mulf %30, %32 : vector<16x128xf32>
    %c16_i32 = arith.constant 16 : i32
    %34 = vector.broadcast %c16_i32 : i32 to vector<16x128xi32>
    %35 = arith.cmpi slt, %31, %34 : vector<16x128xi32>
    %cst_20 = arith.constant 0xFF800000 : f32
    %36 = vector.broadcast %cst_20 : f32 to vector<16x128xf32>
    %37 = arith.select %35, %33, %36 : vector<16x128xi1>, vector<16x128xf32>
    %cst_21 = arith.constant dense<0xFF800000> : vector<16xf32>
    %38 = vector.multi_reduction <maximumf>, %37, %cst_21 [1] : vector<16x128xf32> to vector<16xf32>
    %39 = vector.shape_cast %38 : vector<16xf32> to vector<16x1xf32>
    %40 = vector.broadcast %39 : vector<16x1xf32> to vector<16x128xf32>
    %41 = arith.subf %37, %40 : vector<16x128xf32>
    %42 = math.exp %41 : vector<16x128xf32>
    %cst_22 = arith.constant dense<0.000000e+00> : vector<16xf32>
    %43 = vector.multi_reduction <add>, %42, %cst_22 [1] : vector<16x128xf32> to vector<16xf32>
    %44 = vector.shape_cast %43 : vector<16xf32> to vector<16x1xf32>
    %45 = tpu.reciprocal %44 {approx = true} : vector<16x1xf32> -> vector<16x1xf32>
    %46 = vector.broadcast %45 : vector<16x1xf32> to vector<16x128xf32>
    %47 = arith.mulf %42, %46 : vector<16x128xf32>
    %c0_23 = arith.constant 0 : index
    %c0_24 = arith.constant 0 : index
    %48 = vector.load %arg7[%c0_23, %c0_24] : memref<16x128xf32, #tpu.memory_space<vmem>>, vector<16x128xf32>
    tpu.vector_store %arg7[%c0_23, %c0_24], %47 {strides = array<i32>} : memref<16x128xf32, #tpu.memory_space<vmem>>, vector<16x128xf32>,
    return
  }
  func.func @transform_0(%arg0: i32) -> (i32, i32) {
    %c0_i32 = arith.constant 0 : i32
    %c0_i32_0 = arith.constant 0 : i32
    return %arg0, %c0_i32 : i32, i32
  }
  func.func @transform_1(%arg0: i32) -> (i32, i32) {
    %c0_i32 = arith.constant 0 : i32
    %c0_i32_0 = arith.constant 0 : i32
    %c0_i32_1 = arith.constant 0 : i32
    return %c0_i32, %c0_i32_0 : i32, i32
  }
  func.func @transform_2(%arg0: i32) -> (i32, i32) {
    %c0_i32 = arith.constant 0 : i32
    %c0_i32_0 = arith.constant 0 : i32
    %c0_i32_1 = arith.constant 0 : i32
    return %c0_i32, %c0_i32_0 : i32, i32
  }
  func.func @transform_3(%arg0: i32) -> (i32, i32) {
    %c0_i32 = arith.constant 0 : i32
    %c0_i32_0 = arith.constant 0 : i32
    %c0_i32_1 = arith.constant 0 : i32
    return %c0_i32, %c0_i32_0 : i32, i32
  }
  func.func @transform_4(%arg0: i32) -> (i32, i32) {
    %c0_i32 = arith.constant 0 : i32
    %c0_i32_0 = arith.constant 0 : i32
    %c0_i32_1 = arith.constant 0 : i32
    return %c0_i32, %c0_i32_0 : i32, i32
  }
  func.func @transform_5(%arg0: i32) -> (i32, i32) {
    %c0_i32 = arith.constant 0 : i32
    %c0_i32_0 = arith.constant 0 : i32
    %c0_i32_1 = arith.constant 0 : i32
    return %c0_i32, %c0_i32_0 : i32, i32
  }
  func.func @transform_6(%arg0: i32) -> (i32, i32) {
    %c0_i32 = arith.constant 0 : i32
    %c0_i32_0 = arith.constant 0 : i32
    return %arg0, %c0_i32 : i32, i32
  }
}

</mosaic_0001>

<bundles_post_ra>
// kernel: tpu_custom_call.1
= control target key start
LH: loop header
LB: loop body
LE: loop exit
PB: predicated region body
PF: predicated region fallthrough
CT: control target
= control target key end

     0   :  { %11 = vsyncpa [#allocation3], 0  ;;  %s864_s0 = inlined_call_operand.hbm [shape: bf16[16,128], index: 0, kind: input, shape index: {}]   ;;  %s865_s1 = inlined_call_operand.hbm [shape: bf16[128,128], index: 1, kind: input, shape index: {}]   ;;  %s866_s2 = inlined_call_operand.vmem [shape: f32[1,128], index: 2, kind: input, shape index: {}]   ;;  %s867_s3 = inlined_call_operand.hbm [shape: bf16[128,128], index: 3, kind: input, shape index: {}]   ;;  %s868_s4 = inlined_call_operand.vmem [shape: f32[1,128], index: 4, kind: input, shape index: {}]   ;;  %s869_s5 = inlined_call_operand.hbm [shape: bf16[128,128], index: 5, kind: input, shape index: {}]   ;;  %s870_s6 = inlined_call_operand.hbm [shape: f32[16,128], index: 6, kind: output, shape index: {}]  }
   0x1   :  { %12 = vsyncpa [#allocation6], 0 }
   0x2   :  { %13 = vsyncpa [#allocation9], 0 }
   0x3   :  { %14 = vsyncpa [#allocation4], 0  ;;  %s755_s21 = smov [#allocation5]   ;;  %s756_s23 = smov [#allocation2]  }
   0x4   :  { %s32_s22 = sshll.u32 %s755_s21, 4  ;;  %s20_s24 = sshll.u32 %s756_s23, 4  ;;  %s33_s22 = int_to_ptr.vmem [resolvable:$true] %s32_s22  ;;  %s21_s24 = int_to_ptr.vmem [resolvable:$true] %s20_s24 }
   0x5   :  { %s655_s25 = scalar_lea.vmem %s33_s22, 1024  ;;  %p660_p1 = scmp.lt.s32.totalorder %s33_s22, %s33_s22 }
   0x6   :  { %p656_p0 = scmp.ne.s32.totalorder %s33_s22, %s655_s25  ;;  %p661_p2 = scmp.lt.s32.totalorder %s655_s25, %s655_s25 }
   0x8   :  { %p662_p3 = por %p661_p2, %p660_p1 }
   0xa   :  { %p663_p4 = pnand %p662_p3, %p656_p0 }
   0xc   :  { %666 = shalt.err (!%p663_p4)
}
   0xd   :  { %s757_s26 = smov 64   ;;  %s758_s27 = smov 4  }
   0xe   :  { %38 = dma.hbm_to_vmem [thread:$0]  %s865_s1, 1024, %s33_s22, [#allocation6], %s757_s26, %s757_s26, %s758_s27  }
   0xf   :  { %s675_s30 = scalar_lea.vmem %s21_s24, 128  ;;  %p680_p6 = scmp.lt.s32.totalorder %s21_s24, %s21_s24 }
  0x10   :  { %p676_p5 = scmp.ne.s32.totalorder %s21_s24, %s675_s30  ;;  %p681_p7 = scmp.lt.s32.totalorder %s675_s30, %s675_s30 }
  0x12   :  { %p682_p8 = por %p681_p7, %p680_p6 }
  0x14   :  { %p683_p9 = pnand %p682_p8, %p676_p5 }
  0x16   :  { %686 = shalt.err (!%p683_p9)
}
  0x17   :  { %26 = dma.hbm_to_vmem [thread:$0]  %s864_s0, 128, %s21_s24, [#allocation3], %s757_s26, %s757_s26, %s758_s27  }
  0x18   :  { %s759_s9 = smov [#allocation7]   ;;  %s760_s11 = smov [#allocation8]  }
  0x19   :  { %s46_s10 = sshll.u32 %s759_s9, 4  ;;  %s60_s12 = sshll.u32 %s760_s11, 4  ;;  %s47_s10 = int_to_ptr.vmem [resolvable:$true] %s46_s10  ;;  %s61_s12 = int_to_ptr.vmem [resolvable:$true] %s60_s12 }
  0x1a   :  { %s695_s1 = scalar_lea.vmem %s47_s10, 1024  ;;  %p700_p11 = scmp.lt.s32.totalorder %s47_s10, %s47_s10 }
  0x1b   :  { %p696_p10 = scmp.ne.s32.totalorder %s47_s10, %s695_s1  ;;  %p701_p12 = scmp.lt.s32.totalorder %s695_s1, %s695_s1 }
  0x1d   :  { %p702_p13 = por %p701_p12, %p700_p11 }
  0x1f   :  { %p703_p0 = pnand %p702_p13, %p696_p10 }
  0x21   :  { %706 = shalt.err (!%p703_p0)
}
  0x22   :  { %52 = dma.hbm_to_vmem [thread:$0]  %s867_s3, 1024, %s47_s10, [#allocation6], %s757_s26, %s757_s26, %s758_s27  }
  0x23   :  { %s715_s0 = scalar_lea.vmem %s61_s12, 1024  ;;  %p720_p2 = scmp.lt.s32.totalorder %s61_s12, %s61_s12 }
  0x24   :  { %p716_p1 = scmp.ne.s32.totalorder %s61_s12, %s715_s0  ;;  %p721_p3 = scmp.lt.s32.totalorder %s715_s0, %s715_s0 }
  0x26   :  { %p722_p4 = por %p721_p3, %p720_p2 }
  0x28   :  { %p723_p5 = pnand %p722_p4, %p716_p1 }
  0x2a   :  { %726 = shalt.err (!%p723_p5)
}
  0x2b   :  { %66 = dma.hbm_to_vmem [thread:$0]  %s869_s5, 1024, %s61_s12, [#allocation9], %s757_s26, %s757_s26, %s758_s27  }
  0x2c   :  { %747 = dma.done.wait [#allocation3], 128  }
  0x2d   :  { %748 = vsyncadd [#allocation3], 4294967168 }
  0x2e   :  { %749 = dma.done.wait [#allocation6], 2048  }
  0x2f   :  { %750 = vsyncadd [#allocation6], 4294965248 }
  0x30   :  { %751 = dma.done.wait [#allocation9], 1024  }
  0x31   :  { %752 = vsyncadd [#allocation9], 4294966272  ;;  %v761_v0 = vmov 0.0   ;;  %vm762_vm0 = vmmov 0   ;;  %v610_v1 = vld [vmem:[#allocation5 + $0x38] sm:$0xff]   ;;  %v611_v2 = vld [vmem:[#allocation5 + $0x30] sm:$0xff]   ;;  %v439_v56 = vlaneseq }
  0x32   :  { %539 = vmatprep.subr.bf16.mxu0 %v761_v0  ;;  %555 = vmatprep.mubr.msk.bf16.mxu0 %vm762_vm0, %v761_v0  ;;  %v612_v3 = vld [vmem:[#allocation5 + $0x28] sm:$0xff]   ;;  %v619_v4 = vld [vmem:[#allocation7 + $0x38] sm:$0xff]   ;;  %v613_v5 = vld [vmem:[#allocation5 + $0x20] sm:$0xff]  }
  0x33   :  { %559 = vmatprep.subr.bf16.mxu1 %v761_v0  ;;  %575 = vmatprep.mubr.msk.bf16.mxu1 %vm762_vm0, %v761_v0  ;;  %v620_v6 = vld [vmem:[#allocation7 + $0x30] sm:$0xff]   ;;  %v614_v7 = vld [vmem:[#allocation5 + $0x18] sm:$0xff]   ;;  %v621_v8 = vld [vmem:[#allocation7 + $0x28] sm:$0xff]   ;;  %v440_v58 = vand.u32 127, %v439_v56 }
  0x34   :  { %540 = vmatpush3.bf16.msra.mxu0 %v610_v1  ;;  %560 = vmatpush3.bf16.msra.mxu1 %v619_v4  ;;  %v615_v9 = vld [vmem:[#allocation5 + $0x10] sm:$0xff]   ;;  %v622_v10 = vld [vmem:[#allocation7 + $0x20] sm:$0xff]   ;;  %v616_v11 = vld [vmem:[#allocation5 + $0x8] sm:$0xff]  }
  0x35   :  { %541 = vmatprep.subr.bf16.mxu0 %v761_v0  ;;  %561 = vmatprep.subr.bf16.mxu1 %v761_v0  ;;  %v623_v12 = vld [vmem:[#allocation7 + $0x18] sm:$0xff]   ;;  %v617_v13 = vld [vmem:[#allocation5] sm:$0xff]   ;;  %v624_v15 = vld [vmem:[#allocation7 + $0x10] sm:$0xff]   ;;  %vm443_vm1 = vcmp.lt.s32.totalorder %v440_v58, 16 }
  0x36   :  { %v618_v14 = vld [vmem:[#allocation2] sm:$0xff]   ;;  %v625_v16 = vld [vmem:[#allocation7 + $0x8] sm:$0xff]   ;;  %v626_v17 = vld [vmem:[#allocation7] sm:$0xff]  }
  0x37   :  { %v485_v18 = vld [vmem:[%s866_s2] ss:$0 sm:$0xff]  ;;  %v628_v29 = vld [vmem:[#allocation8 + $0x30] sm:$0xff]   ;;  %v629_v41 = vld [vmem:[#allocation8 + $0x28] sm:$0xff]  }
  0x38   :  { %542 = vmatpush3.bf16.msra.mxu0 %v611_v2  ;;  %562 = vmatpush3.bf16.msra.mxu1 %v620_v6  ;;  %v627_v28 = vld [vmem:[#allocation8 + $0x38] sm:$0xff]   ;;  %v630_v42 = vld [vmem:[#allocation8 + $0x20] sm:$0xff]   ;;  %v632_v44 = vld [vmem:[#allocation8 + $0x10] sm:$0xff]  }
  0x39   :  { %543 = vmatprep.subr.bf16.mxu0 %v761_v0  ;;  %563 = vmatprep.subr.bf16.mxu1 %v761_v0  ;;  %v495_v30 = vld [vmem:[%s868_s4] ss:$0 sm:$0xff]  ;;  %v633_v45 = vld [vmem:[#allocation8 + $0x8] sm:$0xff]   ;;  %v634_v46 = vld [vmem:[#allocation8] sm:$0xff]   ;;  %s763_s4 = smov [#allocation10]  }
  0x3a   :  { %v631_v43 = vld [vmem:[#allocation8 + $0x18] sm:$0xff]   ;;  %s471_s18 = sshll.u32 %s763_s4, 4  ;;  %s472_s18 = int_to_ptr.vmem [resolvable:$true] %s471_s18 }
  0x3b   :  { %s727_s19 = scalar_lea.vmem %s472_s18, 256  ;;  %p732_p7 = scmp.lt.s32.totalorder %s472_s18, %s472_s18 }
  0x3c   :  { %544 = vmatpush3.bf16.msra.mxu0 %v612_v3  ;;  %564 = vmatpush3.bf16.msra.mxu1 %v621_v8  ;;  %p728_p6 = scmp.ne.s32.totalorder %s472_s18, %s727_s19  ;;  %p733_p8 = scmp.lt.s32.totalorder %s727_s19, %s727_s19 }
  0x3d   :  { %545 = vmatprep.subr.bf16.mxu0 %v761_v0  ;;  %565 = vmatprep.subr.bf16.mxu1 %v761_v0 }
  0x3e   :  { %p734_p9 = por %p733_p8, %p732_p7 }
  0x40   :  { %546 = vmatpush3.bf16.msra.mxu0 %v613_v5  ;;  %566 = vmatpush3.bf16.msra.mxu1 %v622_v10  ;;  %p735_p10 = pnand %p734_p9, %p728_p6 }
  0x41   :  { %547 = vmatprep.subr.bf16.mxu0 %v761_v0  ;;  %567 = vmatprep.subr.bf16.mxu1 %v761_v0 }
  0x44   :  { %548 = vmatpush3.bf16.msra.mxu0 %v614_v7  ;;  %568 = vmatpush3.bf16.msra.mxu1 %v623_v12 }
  0x45   :  { %549 = vmatprep.subr.bf16.mxu0 %v761_v0  ;;  %569 = vmatprep.subr.bf16.mxu1 %v761_v0 }
  0x48   :  { %550 = vmatpush3.bf16.msra.mxu0 %v615_v9  ;;  %570 = vmatpush3.bf16.msra.mxu1 %v624_v15 }
  0x49   :  { %551 = vmatprep.subr.bf16.mxu0 %v761_v0  ;;  %571 = vmatprep.subr.bf16.mxu1 %v761_v0 }
  0x4c   :  { %552 = vmatpush3.bf16.msra.mxu0 %v616_v11  ;;  %572 = vmatpush3.bf16.msra.mxu1 %v625_v16 }
  0x4d   :  { %553 = vmatprep.subr.bf16.mxu0 %v761_v0  ;;  %573 = vmatprep.subr.bf16.mxu1 %v761_v0 }
  0x50   :  { %554 = vmatpush3.bf16.msra.mxu0 %v617_v13  ;;  %574 = vmatpush3.bf16.msra.mxu1 %v626_v17 }
  0x51   :  { %579 = vmatprep.subr.bf16.mxu0 %v761_v0 }
  0x53   :  { %556 = vmatmul.mubr.bf16.vlgmr.msra.gmra.mxu0 %v618_v14 }
  0x54   :  { %595 = vmatprep.mubr.msk.bf16.mxu0 %vm762_vm0, %v761_v0  ;;  %580 = vmatpush3.bf16.msra.mxu0 %v627_v28 }
  0x55   :  { %581 = vmatprep.subr.bf16.mxu0 %v761_v0 }
  0x58   :  { %582 = vmatpush3.bf16.msra.mxu0 %v628_v29 }
  0x59   :  { %583 = vmatprep.subr.bf16.mxu0 %v761_v0 }
  0x5c   :  { %584 = vmatpush3.bf16.msra.mxu0 %v629_v41 }
  0x5d   :  { %585 = vmatprep.subr.bf16.mxu0 %v761_v0 }
  0x60   :  { %586 = vmatpush3.bf16.msra.mxu0 %v630_v42 }
  0x61   :  { %587 = vmatprep.subr.bf16.mxu0 %v761_v0 }
  0x64   :  { %588 = vmatpush3.bf16.msra.mxu0 %v631_v43 }
  0x65   :  { %589 = vmatprep.subr.bf16.mxu0 %v761_v0 }
  0x68   :  { %590 = vmatpush3.bf16.msra.mxu0 %v632_v44 }
  0x69   :  { %591 = vmatprep.subr.bf16.mxu0 %v761_v0 }
  0x6c   :  { %592 = vmatpush3.bf16.msra.mxu0 %v633_v45 }
  0x6d   :  { %593 = vmatprep.subr.bf16.mxu0 %v761_v0 }
  0x70   :  { %594 = vmatpush3.bf16.msra.mxu0 %v634_v46 }
 0x113   :  { %v193_v19 = vpop.f32.mrf.mxu0 }
 0x114   :  { %v194_v21 = vadd.f32 %v485_v18, %v193_v19 }
 0x115   :  { %v557_v20 = vpop.f32.mrf.mxu0 }
 0x116   :  { %v200_v25 = vmax.f32 %v194_v21, 0.0 }
 0x117   :  { %v196_v22 = vpop.f32.mrf.mxu0 }
 0x118   :  { %v197_v23 = vadd.f32 %v485_v18, %v196_v22 }
 0x119   :  { %v558_v24 = vpop.f32.mrf.mxu0 }
 0x11a   :  { %v201_v26 = vmax.f32 %v197_v23, 0.0 }
 0x11c   :  { %v219_v27 = vpack.c.bf16 %v201_v26, %v200_v25 }
 0x11e   :  { %576 = vmatmul.mubr.bf16.vlgmr.msra.gmra.mxu1 %v219_v27 }
 0x1de   :  { %v308_v31 = vpop.f32.mrf.mxu1 }
 0x1df   :  { %v309_v32 = vadd.f32 %v495_v30, %v308_v31 }
 0x1e0   :  { %v577_v33 = vpop.f32.mrf.mxu1 }
 0x1e1   :  { %v315_v34 = vmax.f32 %v309_v32, 0.0 }
 0x1e2   :  { %v311_v35 = vpop.f32.mrf.mxu1 }
 0x1e3   :  { %v312_v36 = vadd.f32 %v495_v30, %v311_v35  ;;  %v317_v37 = vmul.f32 %v315_v34, %v315_v34 }
 0x1e4   :  { %v578_v38 = vpop.f32.mrf.mxu1 }
 0x1e5   :  { %v316_v39 = vmax.f32 %v312_v36, 0.0  ;;  %319 = vadd.xlane.f32.xlu0 %v317_v37 }
 0x1e7   :  { %v318_v40 = vmul.f32 %v316_v39, %v316_v39 }
 0x1e9   :  { %321 = vadd.xlane.f32.xlu0 %v318_v40 }
 0x26e   :  { %v320_v47 = vpop.xlane.xlu0 %319 }
 0x26f   :  { %v323_v48 = vmax.f32 %v320_v47, 1e-24 }
 0x271   :  { %635 = vrsqrt.f32 %v323_v48 }
 0x272   :  { %v322_v49 = vpop.xlane.xlu0 %321 }
 0x273   :  { %v324_v50 = vmax.f32 %v322_v49, 1e-24 }
 0x275   :  { %637 = vrsqrt.f32 %v324_v50 }
 0x27e   :  { %v636_v51 = vpop.eup %635 }
 0x27f   :  { %v327_v53 = vmul.f32 %v636_v51, %v315_v34 }
 0x282   :  { %v638_v52 = vpop.eup %637 }
 0x283   :  { %v328_v54 = vmul.f32 %v638_v52, %v316_v39 }
 0x285   :  { %v329_v55 = vpack.c.bf16 %v328_v54, %v327_v53 }
 0x287   :  { %596 = vmatmul.mubr.bf16.vlgmr.msra.gmra.mxu0 %v329_v55 }
 0x347   :  { %v428_v57 = vpop.f32.mrf.mxu0 }
 0x348   :  { %v435_v59 = vmax.f32 %v428_v57, 1e-06 }
 0x349   :  { %v597_v60 = vpop.f32.mrf.mxu0 }
 0x34a   :  { %v437_v61 = vmin.f32 %v435_v59, 0.999999 }
 0x34b   :  { %v431_v62 = vpop.f32.mrf.mxu0 }
 0x34c   :  { %v441_v63 = vmul.f32 16.0, %v437_v61  ;;  %v436_v0 = vmax.f32 %v431_v62, 1e-06 }
 0x34d   :  { %v598_v1 = vpop.f32.mrf.mxu0 }
 0x34e   :  { %v438_v2 = vmin.f32 %v436_v0, 0.999999  ;;  %v444_v3 = vsel %vm443_vm1, %v441_v63, -inf }
 0x34f   :  { %446 = vmax.xlane.f32.xlu1 %v444_v3 }
 0x350   :  { %v442_v4 = vmul.f32 16.0, %v438_v2 }
 0x352   :  { %v445_v5 = vsel %vm443_vm1, %v442_v4, -inf }
 0x353   :  { %448 = vmax.xlane.f32.xlu1 %v445_v5 }
 0x3d8   :  { %v447_v6 = vpop.xlane.xlu1 %446 }
 0x3d9   :  { %v450_v7 = vsub.f32 %v444_v3, %v447_v6 }
 0x3db   :  { %v452_v8 = vmul.f32 1.442695, %v450_v7 }
 0x3dc   :  { %v449_v9 = vpop.xlane.xlu1 %448 }
 0x3dd   :  { %639 = vpow2.f32 %v452_v8  ;;  %v451_v10 = vsub.f32 %v445_v5, %v449_v9 }
 0x3df   :  { %v454_v11 = vmul.f32 1.442695, %v451_v10 }
 0x3e1   :  { %641 = vpow2.f32 %v454_v11 }
 0x3ea   :  { %v640_v12 = vpop.eup %639 }
 0x3eb   :  { %456 = vadd.xlane.f32.xlu0 %v640_v12 }
 0x3ee   :  { %v642_v13 = vpop.eup %641 }
 0x3ef   :  { %458 = vadd.xlane.f32.xlu1 %v642_v13 }
 0x474   :  { %v457_v14 = vpop.xlane.xlu0 %456 }
 0x475   :  { %643 = vrcp.f32 %v457_v14 }
 0x478   :  { %v459_v15 = vpop.xlane.xlu1 %458 }
 0x479   :  { %645 = vrcp.f32 %v459_v15 }
 0x482   :  { %v644_v16 = vpop.eup %643 }
 0x483   :  { %v462_v17 = vmul.f32 %v644_v16, %v640_v12 }
 0x485   :  { %464 = vst [vmem:[#allocation10] sm:$0xff] %v462_v17 }
 0x486   :  { %v646_v18 = vpop.eup %645 }
 0x487   :  { %v463_v19 = vmul.f32 %v646_v18, %v642_v13 }
 0x489   :  { %465 = vst [vmem:[#allocation10 + $0x8] sm:$0xff] %v463_v19 }
 0x48a   :  { %738 = shalt.err (!%p735_p10)
}
 0x48b   :  { %s764_s20 = smov 128   ;;  %s765_s21 = smov 8  }
 0x48c   :  { %477 = dma.vmem_to_hbm [thread:$0]  %s472_s18, 256, %s870_s6, [#allocation4], %s764_s20, %s764_s20, %s765_s21  }
 0x48d   :  { %753 = dma.done.wait [#allocation4], 256  }
 0x48e   :  { %754 = vsyncadd [#allocation4], 4294967040 }
 0x48f   :  { %481 = vsyncpa [#allocation3], 1 }
 0x490   :  { %482 = vsyncpa [#allocation6], 1 }
 0x491   :  { %483 = vsyncpa [#allocation9], 1 }
 0x492   :  { %484 = vsyncpa [#allocation4], 1 }

</bundles_post_ra>
